<compile_context>
chip_gen: v6e
topology: v6e:2x2x1
jax: 0.10.0
libtpu: 0.0.40
codegen_flags: <defaults>
</compile_context>

<pallas_src>
import math

import jax
import jax.numpy as jnp
from jax import lax
from jax.experimental import pallas as pl
from jax.experimental.pallas import tpu as pltpu


_D_CHUNK = 8  # d-steps per group-accumulation chunk


def _round_up(x, m):
    return ((x + m - 1) // m) * m


def _cdiv(a, b):
    return -(-a // b)


def _default_compute_dtype():
    """bf16 elementwise/tanh on chips with bf16 VPU/EUP (v6e, v7x); f32 otherwise."""
    try:
        kind = jax.devices()[0].device_kind.lower()
    except Exception:
        return jnp.float32
    if any(v in kind for v in ("v2", "v3", "v4", "v5")):
        return jnp.float32
    return jnp.bfloat16


def _make_coattn_kernel(strip_rows, compute_dtype):
    def kernel(keys_ref, qt_ref, a_ref, out_ref):
        # keys_ref: (tile_nr, D)       compute dtype, bias already folded in
        # qt_ref:   (D, tile_na)       compute dtype, queries transposed (Na on lanes)
        # a_ref:    (D,)               float32, SMEM (scalar reads)
        # out_ref:  (tile_nr, tile_na) float32
        tile_nr, d_total = keys_ref.shape
        tile_na = qt_ref.shape[-1]
        n_strips = tile_nr // strip_rows

        def strip_body(s, carry):
            row0 = pl.multiple_of(s * strip_rows, strip_rows)
            # Small (strip, D) slab of keys; stays in a handful of vregs for the
            # whole per-strip D chain.
            keys_s = keys_ref[pl.ds(row0, strip_rows), :]
            # f32 accumulator for this strip only (<= ~32 KiB -> vreg-resident).
            acc = jnp.zeros((strip_rows, tile_na), jnp.float32)

            # Static chunked unroll over the small feature dim D (= n_features//2).
            # The dynamic loop boundary is the strip loop, which bounds live ranges;
            # within a chunk the partial sum stays in compute dtype (bf16 on
            # v6e/v7x) and is widened into the f32 accumulator once per chunk.
            for d0 in range(0, d_total, _D_CHUNK):
                d1 = min(d0 + _D_CHUNK, d_total)
                qt_c = qt_ref[d0:d1, :]                               # (chunk, tile_na)
                part = jnp.zeros((strip_rows, tile_na), compute_dtype)
                for j in range(d1 - d0):
                    d = d0 + j
                    a_d = a_ref[d].astype(compute_dtype)              # SMEM scalar
                    e = keys_s[:, d:d + 1] + qt_c[j:j + 1, :]         # (strip, tile_na)
                    part = part + a_d * jnp.tanh(e)
                acc = acc + part.astype(jnp.float32)

            # Single lane-dense store per strip.
            out_ref[pl.ds(row0, strip_rows), :] = acc
            return carry

        lax.fori_loop(0, n_strips, strip_body, 0)

    return kernel


def coattention_forward(receiver, attendant, w_k, w_q, bias, a, compute_dtype=None):
    receiver = jnp.asarray(receiver, jnp.float32)
    attendant = jnp.asarray(attendant, jnp.float32)
    w_k = jnp.asarray(w_k, jnp.float32)
    w_q = jnp.asarray(w_q, jnp.float32)
    bias = jnp.asarray(bias, jnp.float32)
    a = jnp.asarray(a, jnp.float32)

    B, Nr, _ = receiver.shape
    Na = attendant.shape[1]
    D = w_k.shape[1]

    if compute_dtype is None:
        compute_dtype = _default_compute_dtype()

    # Projections + bias fold hoisted to plain XLA (MXU-trivial); the kernel is
    # EUP/VPU-bound on tanh.
    keys_b = (receiver @ w_k + bias[None, None, :]).astype(compute_dtype)   # (B, Nr, D)
    queries_t = jnp.swapaxes(attendant @ w_q, 1, 2).astype(compute_dtype)   # (B, D, Na)

    # ---------------------------- tiling ------------------------------------
    # Lane axis: Na padded to a multiple of 128; lane tile <= 512 so a
    # (strip_rows x tile_na) f32 accumulator is <= ~32 KiB (vreg-resident).
    Na_p = _round_up(Na, 128)
    tile_na = (min(Na_p, 512) // 128) * 128
    while Na_p % tile_na:
        tile_na -= 128

    # Sublane strip: 16-32 rows (multiple of 16 keeps bf16 blocks tile-aligned).
    strip_rows = max(16, min(32, ((32 * 1024) // (tile_na * 4)) // 16 * 16))

    # Rows per grid step: target a ~4 MiB f32 output tile to amortize per-step
    # overhead.  Double-buffered (2x out tile + tiny keys/qt blocks) this stays
    # well under the 32 MiB scoped-VMEM default on v5e/v6e and within v7x's
    # 64 MiB physical VMEM, so no vmem_limit_bytes override is needed.
    rows_budget = max(strip_rows,
                      ((4 * 1024 * 1024) // (tile_na * 4)) // strip_rows * strip_rows)
    Nr_p = _round_up(Nr, strip_rows)
    if Nr_p <= rows_budget:
        tile_nr = Nr_p
    else:
        n_tiles = _cdiv(Nr_p, rows_budget)
        tile_nr = _round_up(_cdiv(Nr_p, n_tiles), strip_rows)
        Nr_p = tile_nr * n_tiles

    # Guarantee >= 2 grid steps on a parallel axis so both v7x TensorCores work.
    if B * (Nr_p // tile_nr) * (Na_p // tile_na) < 2:
        if Nr_p // strip_rows >= 2:
            tile_nr = _round_up(_cdiv(Nr_p, 2), strip_rows)
            Nr_p = 2 * tile_nr
        elif Na_p // 128 >= 2:
            tile_na = _round_up(_cdiv(Na_p, 2), 128)
            Na_p = 2 * tile_na

    # Pad only when needed (no extra HBM pass when the problem is aligned).
    if Nr_p != Nr:
        keys_b = jnp.pad(keys_b, ((0, 0), (0, Nr_p - Nr), (0, 0)))
    if Na_p != Na:
        queries_t = jnp.pad(queries_t, ((0, 0), (0, 0), (0, Na_p - Na)))

    grid = (B, Nr_p // tile_nr, Na_p // tile_na)
    kernel = _make_coattn_kernel(strip_rows, compute_dtype)

    out = pl.pallas_call(
        kernel,
        out_shape=jax.ShapeDtypeStruct((B, Nr_p, Na_p), jnp.float32),
        grid_spec=pltpu.PrefetchScalarGridSpec(
            num_scalar_prefetch=0,
            grid=grid,
            in_specs=[
                pl.BlockSpec((None, tile_nr, D), lambda b, r, n: (b, r, 0)),   # keys + bias
                pl.BlockSpec((None, D, tile_na), lambda b, r, n: (b, 0, n)),   # queries^T
                pl.BlockSpec(memory_space=pltpu.MemorySpace.SMEM),             # a (scalars)
            ],
            out_specs=pl.BlockSpec((None, tile_nr, tile_na), lambda b, r, n: (b, r, n)),
        ),
        compiler_params=pltpu.CompilerParams(
            dimension_semantics=("parallel", "parallel", "parallel")),
    )(keys_b, queries_t, a)

    if Nr_p != Nr or Na_p != Na:
        out = out[:, :Nr, :Na]
    return out


def _xavier_uniform(key, shape, fan_in, fan_out, dtype=jnp.float32):
    bound = math.sqrt(6.0 / (fan_in + fan_out))
    return jax.random.uniform(key, shape, dtype=dtype, minval=-bound, maxval=bound)


def _reference(receiver, attendant, w_k, w_q, bias, a):
    keys = receiver @ w_k
    queries = attendant @ w_q
    e = queries[..., None, :, :] + keys[..., :, None, :] + bias
    return jnp.tanh(e) @ a


def _run_case(key, B, Nr, Na, n_features):
    k_r, k_a, k_wq, k_wk, k_b, k_av = jax.random.split(key, 6)
    D = n_features // 2

    receiver = jax.random.normal(k_r, (B, Nr, n_features), dtype=jnp.float32)
    attendant = jax.random.normal(k_a, (B, Na, n_features), dtype=jnp.float32)

    # Parameters: xavier_uniform_ exactly as in the module's __init__.
    w_q = _xavier_uniform(k_wq, (n_features, D), n_features, D)
    w_k = _xavier_uniform(k_wk, (n_features, D), n_features, D)
    bias = _xavier_uniform(k_b, (D,), 1, D)   # bias.view(D, 1): fan_in=1, fan_out=D
    a = _xavier_uniform(k_av, (D,), 1, D)

    ref = _reference(receiver, attendant, w_k, w_q, bias, a)

    # 1) Exact f32 path: tight check on every chip.
    out_f32 = jax.block_until_ready(
        coattention_forward(receiver, attendant, w_k, w_q, bias, a,
                            compute_dtype=jnp.float32))
    assert out_f32.shape == (B, Nr, Na), out_f32.shape
    assert jnp.allclose(out_f32, ref, atol=1e-5, rtol=1e-5), \
        float(jnp.max(jnp.abs(out_f32 - ref)))

    # 2) Per-chip default path (bf16 elementwise/tanh on v6e/v7x, f32 on v5e).
    cd = _default_compute_dtype()
    out = jax.block_until_ready(
        coattention_forward(receiver, attendant, w_k, w_q, bias, a, compute_dtype=cd))
    assert out.shape == (B, Nr, Na), out.shape
    if cd == jnp.float32:
        assert jnp.allclose(out, ref, atol=1e-5, rtol=1e-5), \
            float(jnp.max(jnp.abs(out - ref)))
    else:
        # bf16 tanh/elementwise (f32 accumulation) vs f32 reference: loose sanity check.
        assert jnp.allclose(out, ref, atol=2.5e-1, rtol=1.5e-1), \
            float(jnp.max(jnp.abs(out - ref)))


if __name__ == "__main__":
    key = jax.random.PRNGKey(0)
    k1, k2 = jax.random.split(key)

    # Small shapes consistent with the module (batch=2, seq=8, hidden=32).
    _run_case(k1, B=2, Nr=8, Na=8, n_features=32)
    # Exercises multi-strip, multi-chunk and the ">=2 grid steps" split (B=1).
    _run_case(k2, B=1, Nr=70, Na=150, n_features=64)

    print("KERNEL_OK")
</pallas_src>

<mosaic_0001>
module attributes {stable_mosaic.version = 11 : i64} {
  func.func @kernel(%arg0: i32, %arg1: i32, %arg2: i32, %arg3: memref<1x32x16xf32, #tpu.memory_space<vmem>>, %arg4: memref<1x16x128xf32, #tpu.memory_space<vmem>>, %arg5: memref<16xf32, #tpu.memory_space<smem>>, %arg6: memref<1x32x128xf32, #tpu.memory_space<vmem>>) attributes {dimension_semantics = [#tpu.dimension_semantics<parallel>, #tpu.dimension_semantics<parallel>, #tpu.dimension_semantics<parallel>], iteration_bounds = array<i64: 2, 1, 1>, scalar_prefetch = 0 : i64, scratch_operands = 0 : i64, tpu.core_type = #tpu.core_type<tc>, window_params = [{transform_indices = @transform_0, window_bounds = array<i64: 1, 32, 16>}, {transform_indices = @transform_1, window_bounds = array<i64: 1, 16, 128>}, {transform_indices = @transform_2, window_bounds = array<i64: 16>}, {transform_indices = @transform_3, window_bounds = array<i64: 1, 32, 128>}]} {
    %c0_i32 = arith.constant 0 : i32
    %c32_i32 = arith.constant 32 : i32
    %0 = arith.muli %c0_i32, %c32_i32 : i32
    %1 = tpu.assume_multiple %0, 32 : i32
    %c0 = arith.constant 0 : index
    %2 = arith.index_cast %1 : i32 to index
    %c0_0 = arith.constant 0 : index
    %3 = vector.load %arg3[%c0, %2, %c0_0] : memref<1x32x16xf32, #tpu.memory_space<vmem>>, vector<1x32x16xf32>
    %4 = vector.shape_cast %3 : vector<1x32x16xf32> to vector<32x16xf32>
    %cst = arith.constant 0.000000e+00 : f32
    %5 = vector.broadcast %cst : f32 to vector<32x128xf32>
    %c0_1 = arith.constant 0 : index
    %c0_2 = arith.constant 0 : index
    %c0_3 = arith.constant 0 : index
    %6 = vector.load %arg4[%c0_1, %c0_2, %c0_3] : memref<1x16x128xf32, #tpu.memory_space<vmem>>, vector<1x8x128xf32>
    %7 = vector.shape_cast %6 : vector<1x8x128xf32> to vector<8x128xf32>
    %cst_4 = arith.constant 0.000000e+00 : f32
    %8 = vector.broadcast %cst_4 : f32 to vector<32x128xf32>
    %c0_5 = arith.constant 0 : index
    %9 = memref.load %arg5[%c0_5] : memref<16xf32, #tpu.memory_space<smem>>
    %10 = vector.extract_strided_slice %4 {offsets = [0, 0], sizes = [32, 1], strides = [1, 1]} : vector<32x16xf32> to vector<32x1xf32>
    %11 = vector.extract_strided_slice %7 {offsets = [0, 0], sizes = [1, 128], strides = [1, 1]} : vector<8x128xf32> to vector<1x128xf32>
    %12 = vector.broadcast %10 : vector<32x1xf32> to vector<32x128xf32>
    %13 = vector.broadcast %11 : vector<1x128xf32> to vector<32x128xf32>
    %14 = arith.addf %12, %13 : vector<32x128xf32>
    %15 = math.tanh %14 : vector<32x128xf32>
    %16 = vector.broadcast %9 : f32 to vector<32x128xf32>
    %17 = arith.mulf %16, %15 : vector<32x128xf32>
    %18 = arith.addf %8, %17 : vector<32x128xf32>
    %c1 = arith.constant 1 : index
    %19 = memref.load %arg5[%c1] : memref<16xf32, #tpu.memory_space<smem>>
    %20 = vector.extract_strided_slice %4 {offsets = [0, 1], sizes = [32, 1], strides = [1, 1]} : vector<32x16xf32> to vector<32x1xf32>
    %21 = vector.extract_strided_slice %7 {offsets = [1, 0], sizes = [1, 128], strides = [1, 1]} : vector<8x128xf32> to vector<1x128xf32>
    %22 = vector.broadcast %20 : vector<32x1xf32> to vector<32x128xf32>
    %23 = vector.broadcast %21 : vector<1x128xf32> to vector<32x128xf32>
    %24 = arith.addf %22, %23 : vector<32x128xf32>
    %25 = math.tanh %24 : vector<32x128xf32>
    %26 = vector.broadcast %19 : f32 to vector<32x128xf32>
    %27 = arith.mulf %26, %25 : vector<32x128xf32>
    %28 = arith.addf %18, %27 : vector<32x128xf32>
    %c2 = arith.constant 2 : index
    %29 = memref.load %arg5[%c2] : memref<16xf32, #tpu.memory_space<smem>>
    %30 = vector.extract_strided_slice %4 {offsets = [0, 2], sizes = [32, 1], strides = [1, 1]} : vector<32x16xf32> to vector<32x1xf32>
    %31 = vector.extract_strided_slice %7 {offsets = [2, 0], sizes = [1, 128], strides = [1, 1]} : vector<8x128xf32> to vector<1x128xf32>
    %32 = vector.broadcast %30 : vector<32x1xf32> to vector<32x128xf32>
    %33 = vector.broadcast %31 : vector<1x128xf32> to vector<32x128xf32>
    %34 = arith.addf %32, %33 : vector<32x128xf32>
    %35 = math.tanh %34 : vector<32x128xf32>
    %36 = vector.broadcast %29 : f32 to vector<32x128xf32>
    %37 = arith.mulf %36, %35 : vector<32x128xf32>
    %38 = arith.addf %28, %37 : vector<32x128xf32>
    %c3 = arith.constant 3 : index
    %39 = memref.load %arg5[%c3] : memref<16xf32, #tpu.memory_space<smem>>
    %40 = vector.extract_strided_slice %4 {offsets = [0, 3], sizes = [32, 1], strides = [1, 1]} : vector<32x16xf32> to vector<32x1xf32>
    %41 = vector.extract_strided_slice %7 {offsets = [3, 0], sizes = [1, 128], strides = [1, 1]} : vector<8x128xf32> to vector<1x128xf32>
    %42 = vector.broadcast %40 : vector<32x1xf32> to vector<32x128xf32>
    %43 = vector.broadcast %41 : vector<1x128xf32> to vector<32x128xf32>
    %44 = arith.addf %42, %43 : vector<32x128xf32>
    %45 = math.tanh %44 : vector<32x128xf32>
    %46 = vector.broadcast %39 : f32 to vector<32x128xf32>
    %47 = arith.mulf %46, %45 : vector<32x128xf32>
    %48 = arith.addf %38, %47 : vector<32x128xf32>
    %c4 = arith.constant 4 : index
    %49 = memref.load %arg5[%c4] : memref<16xf32, #tpu.memory_space<smem>>
    %50 = vector.extract_strided_slice %4 {offsets = [0, 4], sizes = [32, 1], strides = [1, 1]} : vector<32x16xf32> to vector<32x1xf32>
    %51 = vector.extract_strided_slice %7 {offsets = [4, 0], sizes = [1, 128], strides = [1, 1]} : vector<8x128xf32> to vector<1x128xf32>
    %52 = vector.broadcast %50 : vector<32x1xf32> to vector<32x128xf32>
    %53 = vector.broadcast %51 : vector<1x128xf32> to vector<32x128xf32>
    %54 = arith.addf %52, %53 : vector<32x128xf32>
    %55 = math.tanh %54 : vector<32x128xf32>
    %56 = vector.broadcast %49 : f32 to vector<32x128xf32>
    %57 = arith.mulf %56, %55 : vector<32x128xf32>
    %58 = arith.addf %48, %57 : vector<32x128xf32>
    %c5 = arith.constant 5 : index
    %59 = memref.load %arg5[%c5] : memref<16xf32, #tpu.memory_space<smem>>
    %60 = vector.extract_strided_slice %4 {offsets = [0, 5], sizes = [32, 1], strides = [1, 1]} : vector<32x16xf32> to vector<32x1xf32>
    %61 = vector.extract_strided_slice %7 {offsets = [5, 0], sizes = [1, 128], strides = [1, 1]} : vector<8x128xf32> to vector<1x128xf32>
    %62 = vector.broadcast %60 : vector<32x1xf32> to vector<32x128xf32>
    %63 = vector.broadcast %61 : vector<1x128xf32> to vector<32x128xf32>
    %64 = arith.addf %62, %63 : vector<32x128xf32>
    %65 = math.tanh %64 : vector<32x128xf32>
    %66 = vector.broadcast %59 : f32 to vector<32x128xf32>
    %67 = arith.mulf %66, %65 : vector<32x128xf32>
    %68 = arith.addf %58, %67 : vector<32x128xf32>
    %c6 = arith.constant 6 : index
    %69 = memref.load %arg5[%c6] : memref<16xf32, #tpu.memory_space<smem>>
    %70 = vector.extract_strided_slice %4 {offsets = [0, 6], sizes = [32, 1], strides = [1, 1]} : vector<32x16xf32> to vector<32x1xf32>
    %71 = vector.extract_strided_slice %7 {offsets = [6, 0], sizes = [1, 128], strides = [1, 1]} : vector<8x128xf32> to vector<1x128xf32>
    %72 = vector.broadcast %70 : vector<32x1xf32> to vector<32x128xf32>
    %73 = vector.broadcast %71 : vector<1x128xf32> to vector<32x128xf32>
    %74 = arith.addf %72, %73 : vector<32x128xf32>
    %75 = math.tanh %74 : vector<32x128xf32>
    %76 = vector.broadcast %69 : f32 to vector<32x128xf32>
    %77 = arith.mulf %76, %75 : vector<32x128xf32>
    %78 = arith.addf %68, %77 : vector<32x128xf32>
    %c7 = arith.constant 7 : index
    %79 = memref.load %arg5[%c7] : memref<16xf32, #tpu.memory_space<smem>>
    %80 = vector.extract_strided_slice %4 {offsets = [0, 7], sizes = [32, 1], strides = [1, 1]} : vector<32x16xf32> to vector<32x1xf32>
    %81 = vector.extract_strided_slice %7 {offsets = [7, 0], sizes = [1, 128], strides = [1, 1]} : vector<8x128xf32> to vector<1x128xf32>
    %82 = vector.broadcast %80 : vector<32x1xf32> to vector<32x128xf32>
    %83 = vector.broadcast %81 : vector<1x128xf32> to vector<32x128xf32>
    %84 = arith.addf %82, %83 : vector<32x128xf32>
    %85 = math.tanh %84 : vector<32x128xf32>
    %86 = vector.broadcast %79 : f32 to vector<32x128xf32>
    %87 = arith.mulf %86, %85 : vector<32x128xf32>
    %88 = arith.addf %78, %87 : vector<32x128xf32>
    %89 = arith.addf %5, %88 : vector<32x128xf32>
    %c0_6 = arith.constant 0 : index
    %c8 = arith.constant 8 : index
    %c0_7 = arith.constant 0 : index
    %90 = vector.load %arg4[%c0_6, %c8, %c0_7] : memref<1x16x128xf32, #tpu.memory_space<vmem>>, vector<1x8x128xf32>
    %91 = vector.shape_cast %90 : vector<1x8x128xf32> to vector<8x128xf32>
    %cst_8 = arith.constant 0.000000e+00 : f32
    %92 = vector.broadcast %cst_8 : f32 to vector<32x128xf32>
    %c8_9 = arith.constant 8 : index
    %93 = memref.load %arg5[%c8_9] : memref<16xf32, #tpu.memory_space<smem>>
    %94 = vector.extract_strided_slice %4 {offsets = [0, 8], sizes = [32, 1], strides = [1, 1]} : vector<32x16xf32> to vector<32x1xf32>
    %95 = vector.extract_strided_slice %91 {offsets = [0, 0], sizes = [1, 128], strides = [1, 1]} : vector<8x128xf32> to vector<1x128xf32>
    %96 = vector.broadcast %94 : vector<32x1xf32> to vector<32x128xf32>
    %97 = vector.broadcast %95 : vector<1x128xf32> to vector<32x128xf32>
    %98 = arith.addf %96, %97 : vector<32x128xf32>
    %99 = math.tanh %98 : vector<32x128xf32>
    %100 = vector.broadcast %93 : f32 to vector<32x128xf32>
    %101 = arith.mulf %100, %99 : vector<32x128xf32>
    %102 = arith.addf %92, %101 : vector<32x128xf32>
    %c9 = arith.constant 9 : index
    %103 = memref.load %arg5[%c9] : memref<16xf32, #tpu.memory_space<smem>>
    %104 = vector.extract_strided_slice %4 {offsets = [0, 9], sizes = [32, 1], strides = [1, 1]} : vector<32x16xf32> to vector<32x1xf32>
    %105 = vector.extract_strided_slice %91 {offsets = [1, 0], sizes = [1, 128], strides = [1, 1]} : vector<8x128xf32> to vector<1x128xf32>
    %106 = vector.broadcast %104 : vector<32x1xf32> to vector<32x128xf32>
    %107 = vector.broadcast %105 : vector<1x128xf32> to vector<32x128xf32>
    %108 = arith.addf %106, %107 : vector<32x128xf32>
    %109 = math.tanh %108 : vector<32x128xf32>
    %110 = vector.broadcast %103 : f32 to vector<32x128xf32>
    %111 = arith.mulf %110, %109 : vector<32x128xf32>
    %112 = arith.addf %102, %111 : vector<32x128xf32>
    %c10 = arith.constant 10 : index
    %113 = memref.load %arg5[%c10] : memref<16xf32, #tpu.memory_space<smem>>
    %114 = vector.extract_strided_slice %4 {offsets = [0, 10], sizes = [32, 1], strides = [1, 1]} : vector<32x16xf32> to vector<32x1xf32>
    %115 = vector.extract_strided_slice %91 {offsets = [2, 0], sizes = [1, 128], strides = [1, 1]} : vector<8x128xf32> to vector<1x128xf32>
    %116 = vector.broadcast %114 : vector<32x1xf32> to vector<32x128xf32>
    %117 = vector.broadcast %115 : vector<1x128xf32> to vector<32x128xf32>
    %118 = arith.addf %116, %117 : vector<32x128xf32>
    %119 = math.tanh %118 : vector<32x128xf32>
    %120 = vector.broadcast %113 : f32 to vector<32x128xf32>
    %121 = arith.mulf %120, %119 : vector<32x128xf32>
    %122 = arith.addf %112, %121 : vector<32x128xf32>
    %c11 = arith.constant 11 : index
    %123 = memref.load %arg5[%c11] : memref<16xf32, #tpu.memory_space<smem>>
    %124 = vector.extract_strided_slice %4 {offsets = [0, 11], sizes = [32, 1], strides = [1, 1]} : vector<32x16xf32> to vector<32x1xf32>
    %125 = vector.extract_strided_slice %91 {offsets = [3, 0], sizes = [1, 128], strides = [1, 1]} : vector<8x128xf32> to vector<1x128xf32>
    %126 = vector.broadcast %124 : vector<32x1xf32> to vector<32x128xf32>
    %127 = vector.broadcast %125 : vector<1x128xf32> to vector<32x128xf32>
    %128 = arith.addf %126, %127 : vector<32x128xf32>
    %129 = math.tanh %128 : vector<32x128xf32>
    %130 = vector.broadcast %123 : f32 to vector<32x128xf32>
    %131 = arith.mulf %130, %129 : vector<32x128xf32>
    %132 = arith.addf %122, %131 : vector<32x128xf32>
    %c12 = arith.constant 12 : index
    %133 = memref.load %arg5[%c12] : memref<16xf32, #tpu.memory_space<smem>>
    %134 = vector.extract_strided_slice %4 {offsets = [0, 12], sizes = [32, 1], strides = [1, 1]} : vector<32x16xf32> to vector<32x1xf32>
    %135 = vector.extract_strided_slice %91 {offsets = [4, 0], sizes = [1, 128], strides = [1, 1]} : vector<8x128xf32> to vector<1x128xf32>
    %136 = vector.broadcast %134 : vector<32x1xf32> to vector<32x128xf32>
    %137 = vector.broadcast %135 : vector<1x128xf32> to vector<32x128xf32>
    %138 = arith.addf %136, %137 : vector<32x128xf32>
    %139 = math.tanh %138 : vector<32x128xf32>
    %140 = vector.broadcast %133 : f32 to vector<32x128xf32>
    %141 = arith.mulf %140, %139 : vector<32x128xf32>
    %142 = arith.addf %132, %141 : vector<32x128xf32>
    %c13 = arith.constant 13 : index
    %143 = memref.load %arg5[%c13] : memref<16xf32, #tpu.memory_space<smem>>
    %144 = vector.extract_strided_slice %4 {offsets = [0, 13], sizes = [32, 1], strides = [1, 1]} : vector<32x16xf32> to vector<32x1xf32>
    %145 = vector.extract_strided_slice %91 {offsets = [5, 0], sizes = [1, 128], strides = [1, 1]} : vector<8x128xf32> to vector<1x128xf32>
    %146 = vector.broadcast %144 : vector<32x1xf32> to vector<32x128xf32>
    %147 = vector.broadcast %145 : vector<1x128xf32> to vector<32x128xf32>
    %148 = arith.addf %146, %147 : vector<32x128xf32>
    %149 = math.tanh %148 : vector<32x128xf32>
    %150 = vector.broadcast %143 : f32 to vector<32x128xf32>
    %151 = arith.mulf %150, %149 : vector<32x128xf32>
    %152 = arith.addf %142, %151 : vector<32x128xf32>
    %c14 = arith.constant 14 : index
    %153 = memref.load %arg5[%c14] : memref<16xf32, #tpu.memory_space<smem>>
    %154 = vector.extract_strided_slice %4 {offsets = [0, 14], sizes = [32, 1], strides = [1, 1]} : vector<32x16xf32> to vector<32x1xf32>
    %155 = vector.extract_strided_slice %91 {offsets = [6, 0], sizes = [1, 128], strides = [1, 1]} : vector<8x128xf32> to vector<1x128xf32>
    %156 = vector.broadcast %154 : vector<32x1xf32> to vector<32x128xf32>
    %157 = vector.broadcast %155 : vector<1x128xf32> to vector<32x128xf32>
    %158 = arith.addf %156, %157 : vector<32x128xf32>
    %159 = math.tanh %158 : vector<32x128xf32>
    %160 = vector.broadcast %153 : f32 to vector<32x128xf32>
    %161 = arith.mulf %160, %159 : vector<32x128xf32>
    %162 = arith.addf %152, %161 : vector<32x128xf32>
    %c15 = arith.constant 15 : index
    %163 = memref.load %arg5[%c15] : memref<16xf32, #tpu.memory_space<smem>>
    %164 = vector.extract_strided_slice %4 {offsets = [0, 15], sizes = [32, 1], strides = [1, 1]} : vector<32x16xf32> to vector<32x1xf32>
    %165 = vector.extract_strided_slice %91 {offsets = [7, 0], sizes = [1, 128], strides = [1, 1]} : vector<8x128xf32> to vector<1x128xf32>
    %166 = vector.broadcast %164 : vector<32x1xf32> to vector<32x128xf32>
    %167 = vector.broadcast %165 : vector<1x128xf32> to vector<32x128xf32>
    %168 = arith.addf %166, %167 : vector<32x128xf32>
    %169 = math.tanh %168 : vector<32x128xf32>
    %170 = vector.broadcast %163 : f32 to vector<32x128xf32>
    %171 = arith.mulf %170, %169 : vector<32x128xf32>
    %172 = arith.addf %162, %171 : vector<32x128xf32>
    %173 = arith.addf %89, %172 : vector<32x128xf32>
    %c0_10 = arith.constant 0 : index
    %174 = arith.index_cast %1 : i32 to index
    %c0_11 = arith.constant 0 : index
    %175 = vector.load %arg6[%c0_10, %174, %c0_11] : memref<1x32x128xf32, #tpu.memory_space<vmem>>, vector<1x32x128xf32>
    %176 = vector.shape_cast %175 : vector<1x32x128xf32> to vector<32x128xf32>
    %177 = vector.shape_cast %173 : vector<32x128xf32> to vector<1x32x128xf32>
    tpu.vector_store %arg6[%c0_10, %174, %c0_11], %177 {strides = array<i32>} : memref<1x32x128xf32, #tpu.memory_space<vmem>>, vector<1x32x128xf32>,
    %c1_i32 = arith.constant 1 : i32
    return
  }
  func.func @transform_0(%arg0: i32, %arg1: i32, %arg2: i32) -> (i32, i32, i32) {
    %c0_i32 = arith.constant 0 : i32
    %c0_i32_0 = arith.constant 0 : i32
    return %arg0, %arg1, %c0_i32 : i32, i32, i32
  }
  func.func @transform_1(%arg0: i32, %arg1: i32, %arg2: i32) -> (i32, i32, i32) {
    %c0_i32 = arith.constant 0 : i32
    %c0_i32_0 = arith.constant 0 : i32
    return %arg0, %c0_i32, %arg2 : i32, i32, i32
  }
  func.func @transform_2(%arg0: i32, %arg1: i32, %arg2: i32) -> i32 {
    %c0_i32 = arith.constant 0 : i32
    %c0_i32_0 = arith.constant 0 : i32
    return %c0_i32 : i32
  }
  func.func @transform_3(%arg0: i32, %arg1: i32, %arg2: i32) -> (i32, i32, i32) {
    %c0_i32 = arith.constant 0 : i32
    return %arg0, %arg1, %arg2 : i32, i32, i32
  }
}

</mosaic_0001>

<bundles_post_ra>
// kernel: tpu_custom_call.1
= control target key start
LH: loop header
LB: loop body
LE: loop exit
PB: predicated region body
PF: predicated region fallthrough
CT: control target
= control target key end

     0   :  { %8 = vsyncpa [#allocation4], 0  ;;  %s1860_s0 = inlined_call_operand.vmem [shape: f32[2,32,16], index: 0, kind: input, shape index: {}]   ;;  %s1861_s1 = inlined_call_operand.vmem [shape: f32[2,16,128], index: 1, kind: input, shape index: {}]   ;;  %s1862_s2 = inlined_call_operand.vmem [shape: f32[16], index: 2, kind: input, shape index: {}]   ;;  %s1863_s3 = inlined_call_operand.hbm [shape: f32[2,32,128], index: 3, kind: output, shape index: {}]  }
   0x1   :  { %9 = vsyncpa [#allocation3], 0 }
   0x2   :  { %11 = vsyncpa [#allocation3 + $0x1], 0  ;;  %s1430_s12 = smov 0   ;;  %s1432_s13 = smov 0  }
   0x3   :  { %s1434_s14 = smov 0   ;;  %s1436_s15 = smov 0  }
   0x4   :  { %s1438_s16 = smov 0   ;;  %s1440_s17 = smov 0  }
   0x5 LB: > { %s1014_s18 = sadd.s32 4294967295, %s1388_s17   ;;  %s1015_s19 = sadd.s32 4294967294, %s1388_s17   ;;  %s1388_s17 = sphi %s1440_s17, %s17_s17   ;;  %s1384_s16 = sphi %s1438_s16, %s1872_s16   ;;  %s1380_s15 = sphi %s1436_s15, %s1871_s15   ;;  %s1376_s14 = sphi %s1434_s14, %s1870_s14   ;;  %s1372_s13 = sphi %s1432_s13, %s1869_s13   ;;  %s1368_s12 = sphi %s1430_s12, %s1868_s12  }
   0x6   : > { %s36_s20 = sadd.s32 1, %s1384_s16  ;;  %s124_s21 = sadd.s32 1, %s1376_s14 }
   0x7   : > { %p38_p0 = scmp.ge.s32.totalorder %s36_s20, 2  ;;  %p134_p1 = scmp.ne.s32.totalorder %s1376_s14, %s1372_s13 }
   0x8   : > { %p135_p2 = scmp.eq.s32.totalorder %s1014_s18, 1  ;;  %p140_p3 = scmp.ne.s32.totalorder %s1372_s13, %s1368_s12 }
   0x9   : > { %s1874_s20 = smov (%p38_p0, %s36_s20), 0  ;;  %p141_p5 = scmp.eq.s32.totalorder %s1015_s19, 1 }
   0xa   : > { %p1470_p4 = por %p135_p2, %p134_p1  ;;  %s117_s23 = ssub.s32 %s1384_s16, %s1874_s20 }
   0xb   : > { %p1016_p6 = scmp.ge.s32.totalorder %s1388_s17, 1  ;;  %p122_p7 = scmp.eq.s32.totalorder %s117_s23, 0 }
   0xc   : > { %p1477_p8 = por %p141_p5, %p140_p3  ;;  %p148_p9 = scmp.lt.s32.totalorder %s1388_s17, 3 }
   0xd   : > { %s1483_s25 = scalar_select %p122_p7, %s1376_s14, %s124_s21  }
   0xe   : > { %p1485_p10 = pnand %p1016_p6, %p148_p9  ;;  %p1489_p11 = scmp.eq.s32.totalorder %s1014_s18, 0 }
   0xf   : > { %s161_s30 = sshll.u32 %s1862_s2, 4  ;;  %s162_s30 = int_to_ptr.vmem [resolvable:$true] %s161_s30 }
  0x10   : > { %p1055_p12 = pneg %p1485_p10  ;;  %s1293_s4 = scalar_lea.vmem %s162_s30, 16 }
  0x11   : > { %p1294_p0 = scmp.ne.s32.totalorder %s162_s30, %s1293_s4  ;;  %p1301_p5 = scmp.lt.s32.totalorder %s162_s30, %s162_s30 }
  0x12   : > { %p1056_p13 = pnand %p1489_p11, %p1055_p12  ;;  %p1302_p6 = scmp.lt.s32.totalorder %s1293_s4, %s1293_s4 }
  0x14   : > { %p1295_p1 = pneg %p1056_p13  ;;  %p1303_p7 = por %p1302_p6, %p1301_p5 }
  0x16   : > { %p1296_p2 = pnand %p1295_p1, %p1294_p0 }
  0x18   : > { %p1297_p3 = pneg %p1296_p2 }
  0x1a   : > { %p1304_p9 = pnand %p1303_p7, %p1297_p3 }
  0x1c   : > { %1307 = shalt.err (!%p1304_p9)
}
  0x1d   : > { %s1390_s5 = smov [#allocation2]   ;;  %198 = sbr.rel (%p1485_p10) target bundleno = 371 (0x173), region = 32 }
  0x1e   : > { %1058 = dma.vmem_to_smem (!%p1056_p13), %s162_s30, 16, %s1390_s5, [#allocation4]  }
  0x22   : > { %1359 = dma.done.wait (%p1489_p11), [#allocation4], 16  }
  0x23   : > { %1361 = vsyncadd (%p1489_p11), [#allocation4], 4294967280 }
  0x24   : > { %204 = sfence }
  0x25   : > { %p236_p12 = scmp.lt.s32.totalorder %s1380_s15, 1  ;;  %v1391_v0 = vmov 0   ;;  %v1392_v5 = vmov 1   ;;  %v1393_v6 = vmov 2   ;;  %v1394_v7 = vmov 3   ;;  %s259_s23 = sld [smem:[#allocation2]] }
  0x26   : > { %1134 = vset.pattern.permute.xlu1 %v1391_v0  ;;  %1133 = vset.pattern.permute.xlu0 %v1391_v0  ;;  %v1395_v8 = vmov 4   ;;  %v1396_v9 = vmov 5   ;;  %v1397_v10 = vmov 6   ;;  %v1398_v11 = vmov 7   ;;  %s1026_s26 = sld [smem:[#allocation2 + $0x1]] }
  0x27   : > { %s1508_s6 = scalar_select %p236_p12, %s1380_s15, 1  ;;  %v1399_v12 = vmov 8   ;;  %v1400_v13 = vmov 9   ;;  %v1401_v14 = vmov 10   ;;  %v1402_v15 = vmov 11  }
  0x28   : > { %v1403_v16 = vmov 12   ;;  %v1404_v17 = vmov 13   ;;  %v1405_v18 = vmov 14   ;;  %v1406_v19 = vmov 15   ;;  %s1610_s27 = sld [smem:[#allocation2 + $0x2]] }
  0x29   : > { %s1046_s7 = sshll.u32 %s1508_s6, 5  ;;  %v280_v20 = vlaneseq  ;;  %s1047_s11 = sshll.u32 %s1508_s6, 4 }
  0x2a   : > { %s243_s10 = scalar_lea.vmem %s1860_s0, %s1046_s7  ;;  %s1582_s21 = scalar_lea.vmem %s1861_s1, %s1047_s11 }
  0x2b   : > { %v1514_v1 = vld [vmem:[%s243_s10 + $0x10] sm:$0xff]  ;;  %v1516_v2 = vld [vmem:[%s243_s10] sm:$0xff]  ;;  %v1520_v3 = vld [vmem:[%s243_s10 + $0x18] sm:$0xff]  ;;  %v1576_v21 = vshrl.u32 %v280_v20, 7  ;;  %v292_v54 = vstv %s259_s23  ;;  %s1028_s28 = sld [smem:[#allocation2 + $0x3]] }
  0x2c   : > { %272 = vperm.xlu1 %1134, %v1514_v1   ;;  %262 = vperm.xlu0 %1133, %v1516_v2   ;;  %v1522_v4 = vld [vmem:[%s243_s10 + $0x8] sm:$0xff]  ;;  %v1586_v23 = vld [vmem:[%s1582_s21] sm:$0xff]  ;;  %v330_v55 = vstv %s1026_s26  ;;  %s1029_s29 = sld [smem:[#allocation2 + $0x4]] }
  0x2d   : > { %v282_v22 = vsub.s32 0, %v1576_v21  ;;  %v320_v29 = vsub.s32 1, %v1576_v21  ;;  %v358_v39 = vsub.s32 2, %v1576_v21  ;;  %v396_v45 = vsub.s32 3, %v1576_v21  ;;  %s1030_s30 = sld [smem:[#allocation2 + $0x5]] }
  0x2e   : > { %v434_v62 = vsub.s32 4, %v1576_v21  ;;  %s1031_s4 = sld [smem:[#allocation2 + $0x6]] }
  0x2f   : > { %v283_v24 = vrot.slane %v1586_v23, %v282_v22  ;;  %v321_v34 = vrot.slane %v1586_v23, %v320_v29  ;;  %v359_v44 = vrot.slane %v1586_v23, %v358_v39  ;;  %v397_v50 = vrot.slane %v1586_v23, %v396_v45  ;;  %s1032_s5 = sld [smem:[#allocation2 + $0x7]] }
  0x30   : > { %277 = vperm.xlu1 %1134, %v1520_v3   ;;  %267 = vperm.xlu0 %1133, %v1522_v4   ;;  %s1034_s6 = sld [smem:[#allocation2 + $0x9]] }
  0x31   : > { %s1033_s7 = sld [smem:[#allocation2 + $0x8]] }
  0x32   : > { %s1710_s8 = sld [smem:[#allocation2 + $0xa]] }
  0x33   : > { %s1714_s9 = sld [smem:[#allocation2 + $0xb]] }
  0x34   : > { %1136 = vset.pattern.permute.xlu1 %v1392_v5  ;;  %1135 = vset.pattern.permute.xlu0 %v1392_v5  ;;  %s1723_s10 = sld [smem:[#allocation2 + $0xc]] }
  0x35   : > { %307 = vperm.xlu1 %1136, %v1522_v4   ;;  %303 = vperm.xlu0 %1135, %v1516_v2   ;;  %s1731_s11 = sld [smem:[#allocation2 + $0xd]] }
  0x36   : > { %s1746_s18 = sld [smem:[#allocation2 + $0xf]] }
  0x37   : > { %s1759_s19 = sld [smem:[#allocation2 + $0xe]] }
  0x39   : > { %311 = vperm.xlu1 %1136, %v1514_v1   ;;  %315 = vperm.xlu0 %1135, %v1520_v3  }
  0x3d   : > { %1137 = vset.pattern.permute.xlu1 %v1393_v6  ;;  %1138 = vset.pattern.permute.xlu0 %v1393_v6 }
  0x3e   : > { %341 = vperm.xlu1 %1137, %v1516_v2   ;;  %345 = vperm.xlu0 %1138, %v1522_v4  }
  0x42   : > { %349 = vperm.xlu1 %1137, %v1514_v1   ;;  %1139 = vset.pattern.permute.xlu0 %v1394_v7 }
  0x43   : > { %379 = vperm.xlu0 %1139, %v1516_v2  }
  0x46   : > { %353 = vperm.xlu1 %1137, %v1520_v3  }
  0x47   : > { %391 = vperm.xlu0 %1139, %v1520_v3  }
  0x4a   : > { %1140 = vset.pattern.permute.xlu1 %v1394_v7 }
  0x4b   : > { %383 = vperm.xlu1 %1140, %v1522_v4   ;;  %1142 = vset.pattern.permute.xlu0 %v1395_v8 }
  0x4c   : > { %421 = vperm.xlu0 %1142, %v1522_v4  }
  0x4f   : > { %387 = vperm.xlu1 %1140, %v1514_v1  }
  0x50   : > { %1143 = vset.pattern.permute.xlu0 %v1396_v9 }
  0x51   : > { %455 = vperm.xlu0 %1143, %v1516_v2  }
  0x53   : > { %1141 = vset.pattern.permute.xlu1 %v1395_v8 }
  0x54   : > { %417 = vperm.xlu1 %1141, %v1516_v2  }
  0x55   : > { %467 = vperm.xlu0 %1143, %v1520_v3  }
  0x58   : > { %425 = vperm.xlu1 %1141, %v1514_v1  }
  0x59   : > { %1146 = vset.pattern.permute.xlu0 %v1397_v10 }
  0x5a   : > { %497 = vperm.xlu0 %1146, %v1522_v4  }
  0x5c   : > { %429 = vperm.xlu1 %1141, %v1520_v3  }
  0x5e   : > { %1147 = vset.pattern.permute.xlu0 %v1398_v11 }
  0x5f   : > { %531 = vperm.xlu0 %1147, %v1516_v2  }
  0x60   : > { %1144 = vset.pattern.permute.xlu1 %v1396_v9 }
  0x61   : > { %459 = vperm.xlu1 %1144, %v1522_v4  }
  0x63   : > { %543 = vperm.xlu0 %1147, %v1520_v3  }
  0x65   : > { %463 = vperm.xlu1 %1144, %v1514_v1  }
  0x67   : > { %1150 = vset.pattern.permute.xlu0 %v1399_v12 }
  0x68   : > { %578 = vperm.xlu0 %1150, %v1522_v4  }
  0x69   : > { %1145 = vset.pattern.permute.xlu1 %v1397_v10 }
  0x6a   : > { %493 = vperm.xlu1 %1145, %v1516_v2  }
  0x6c   : > { %1151 = vset.pattern.permute.xlu0 %v1400_v13 }
  0x6d   : > { %612 = vperm.xlu0 %1151, %v1516_v2  }
  0x6e   : > { %501 = vperm.xlu1 %1145, %v1514_v1  }
  0x71   : > { %624 = vperm.xlu0 %1151, %v1520_v3  }
  0x72   : > { %505 = vperm.xlu1 %1145, %v1520_v3  }
  0x75   : > { %1154 = vset.pattern.permute.xlu0 %v1401_v14 }
  0x76   : > { %1148 = vset.pattern.permute.xlu1 %v1398_v11  ;;  %654 = vperm.xlu0 %1154, %v1522_v4  }
  0x77   : > { %535 = vperm.xlu1 %1148, %v1522_v4  }
  0x7a   : > { %1155 = vset.pattern.permute.xlu0 %v1402_v15 }
  0x7b   : > { %539 = vperm.xlu1 %1148, %v1514_v1   ;;  %688 = vperm.xlu0 %1155, %v1516_v2  }
  0x7f   : > { %1149 = vset.pattern.permute.xlu1 %v1399_v12  ;;  %700 = vperm.xlu0 %1155, %v1520_v3  }
  0x80   : > { %574 = vperm.xlu1 %1149, %v1516_v2  }
  0x83   : > { %1158 = vset.pattern.permute.xlu0 %v1403_v16 }
  0x84   : > { %582 = vperm.xlu1 %1149, %v1514_v1   ;;  %730 = vperm.xlu0 %1158, %v1522_v4  }
  0x88   : > { %586 = vperm.xlu1 %1149, %v1520_v3   ;;  %1159 = vset.pattern.permute.xlu0 %v1404_v17 }
  0x89   : > { %764 = vperm.xlu0 %1159, %v1516_v2  }
  0x8c   : > { %1152 = vset.pattern.permute.xlu1 %v1400_v13 }
  0x8d   : > { %616 = vperm.xlu1 %1152, %v1522_v4   ;;  %776 = vperm.xlu0 %1159, %v1520_v3  }
  0x91   : > { %620 = vperm.xlu1 %1152, %v1514_v1   ;;  %1162 = vset.pattern.permute.xlu0 %v1405_v18 }
  0x92   : > { %806 = vperm.xlu0 %1162, %v1522_v4  }
  0x95   : > { %1153 = vset.pattern.permute.xlu1 %v1401_v14 }
  0x96   : > { %650 = vperm.xlu1 %1153, %v1516_v2   ;;  %1163 = vset.pattern.permute.xlu0 %v1406_v19 }
  0x97   : > { %840 = vperm.xlu0 %1163, %v1516_v2  }
  0x9a   : > { %658 = vperm.xlu1 %1153, %v1514_v1  }
  0x9b   : > { %852 = vperm.xlu0 %1163, %v1520_v3  }
  0x9e   : > { %662 = vperm.xlu1 %1153, %v1520_v3  }
  0xa2   : > { %1156 = vset.pattern.permute.xlu1 %v1402_v15  ;;  %v1618_v15 = vrot.slane %v1586_v23, %v434_v62 }
  0xa3   : > { %692 = vperm.xlu1 %1156, %v1522_v4  }
  0xa7   : > { %v273_v25 = vpop.permute.xlu1 %272  ;;  %696 = vperm.xlu1 %1156, %v1514_v1   ;;  %v263_v26 = vpop.permute.xlu0 %262 }
  0xa8   : > { %v286_v27 = vadd.f32 %v283_v24, %v273_v25  ;;  %v284_v28 = vadd.f32 %v283_v24, %v263_v26 }
  0xab   : > { %v278_v30 = vpop.permute.xlu1 %277  ;;  %1157 = vset.pattern.permute.xlu1 %v1403_v16  ;;  %v268_v31 = vpop.permute.xlu0 %267 }
  0xac   : > { %v287_v32 = vadd.f32 %v283_v24, %v278_v30  ;;  %726 = vperm.xlu1 %1157, %v1516_v2   ;;  %v285_v33 = vadd.f32 %v283_v24, %v268_v31 }
  0xae   : > { %1165 = vtanh.f32 %v285_v33 }
  0xaf   : > { %1167 = vtanh.f32 %v284_v28 }
  0xb0   : > { %v308_v35 = vpop.permute.xlu1 %307  ;;  %734 = vperm.xlu1 %1157, %v1514_v1   ;;  %v304_v36 = vpop.permute.xlu0 %303 }
  0xb1   : > { %v323_v37 = vadd.f32 %v321_v34, %v308_v35  ;;  %v322_v38 = vadd.f32 %v321_v34, %v304_v36 }
  0xb3   : > { %1169 = vtanh.f32 %v323_v37 }
  0xb4   : > { %1171 = vtanh.f32 %v322_v38  ;;  %v312_v40 = vpop.permute.xlu1 %311  ;;  %738 = vperm.xlu1 %1157, %v1520_v3   ;;  %v316_v41 = vpop.permute.xlu0 %315 }
  0xb5   : > { %1173 = vtanh.f32 %v286_v27  ;;  %v324_v42 = vadd.f32 %v321_v34, %v312_v40  ;;  %v325_v43 = vadd.f32 %v321_v34, %v316_v41  ;;  %v368_v27 = vstv %s1610_s27  ;;  %s1048_s27 = sshll.u32 %s1380_s15, 9 }
  0xb6   : > { %1175 = vtanh.f32 %v287_v32 }
  0xb7   : > { %1177 = vtanh.f32 %v324_v42  ;;  %v406_v42 = vstv %s1028_s28 }
  0xb8   : > { %1179 = vtanh.f32 %v325_v43  ;;  %1160 = vset.pattern.permute.xlu1 %v1404_v17 }
  0xb9   : > { %768 = vperm.xlu1 %1160, %v1522_v4   ;;  %v342_v46 = vpop.permute.xlu1 %341  ;;  %v346_v47 = vpop.permute.xlu0 %345 }
  0xba   : > { %v360_v48 = vadd.f32 %v359_v44, %v342_v46  ;;  %v361_v49 = vadd.f32 %v359_v44, %v346_v47 }
  0xbb   : > { %v1166_v51 = vpop.eup %1165 }
  0xbc   : > { %1181 = vtanh.f32 %v360_v48  ;;  %v1168_v52 = vpop.eup %1167  ;;  %v294_v58 = vmul.f32 %v1166_v51, %v292_v54 }
  0xbd   : > { %1183 = vtanh.f32 %v361_v49  ;;  %772 = vperm.xlu1 %1160, %v1514_v1   ;;  %v350_v53 = vpop.permute.xlu1 %349  ;;  %v293_v61 = vmul.f32 %v1168_v52, %v292_v54 }
  0xbe   : > { %v362_v56 = vadd.f32 %v359_v44, %v350_v53  ;;  %v380_v57 = vpop.permute.xlu0 %379 }
  0xbf   : > { %v398_v59 = vadd.f32 %v397_v50, %v380_v57 }
  0xc0   : > { %v1170_v60 = vpop.eup %1169  ;;  %1185 = vtanh.f32 %v362_v56  ;;  %v510_v56 = vsub.s32 6, %v1576_v21 }
  0xc1   : > { %v1172_v63 = vpop.eup %1171  ;;  %v332_v0 = vmul.f32 %v1170_v60, %v330_v55  ;;  %1187 = vtanh.f32 %v398_v59  ;;  %1161 = vset.pattern.permute.xlu1 %v1405_v18  ;;  %v354_v5 = vpop.permute.xlu1 %353 }
  0xc2   : > { %v1174_v6 = vpop.eup %1173  ;;  %v331_v7 = vmul.f32 %v1172_v63, %v330_v55  ;;  %v363_v8 = vadd.f32 %v359_v44, %v354_v5  ;;  %802 = vperm.xlu1 %1161, %v1516_v2   ;;  %v392_v9 = vpop.permute.xlu0 %391  ;;  %v472_v2 = vsub.s32 5, %v1576_v21  ;;  %v444_v63 = vstv %s1029_s29 }
  0xc3   : > { %v1176_v10 = vpop.eup %1175  ;;  %v336_v11 = vadd.f32 %v332_v0, %v294_v58  ;;  %v401_v12 = vadd.f32 %v397_v50, %v392_v9  ;;  %v295_v17 = vmul.f32 %v1174_v6, %v292_v54  ;;  %v511_v0 = vrot.slane %v1586_v23, %v510_v56 }
  0xc4   : > { %v1178_v13 = vpop.eup %1177  ;;  %v335_v14 = vadd.f32 %v331_v7, %v293_v61  ;;  %1189 = vtanh.f32 %v363_v8  ;;  %v296_v20 = vmul.f32 %v1176_v10, %v292_v54  ;;  %v1627_v34 = vrot.slane %v1586_v23, %v472_v2 }
  0xc5   : > { %v1180_v16 = vpop.eup %1179  ;;  %v333_v18 = vmul.f32 %v1178_v13, %v330_v55  ;;  %1191 = vtanh.f32 %v401_v12 }
  0xc6   : > { %v334_v24 = vmul.f32 %v1180_v16, %v330_v55  ;;  %810 = vperm.xlu1 %1161, %v1514_v1   ;;  %v384_v25 = vpop.permute.xlu1 %383  ;;  %v548_v16 = vsub.s32 7, %v1576_v21 }
  0xc7   : > { %v337_v26 = vadd.f32 %v333_v18, %v295_v17  ;;  %v399_v28 = vadd.f32 %v397_v50, %v384_v25  ;;  %v422_v30 = vpop.permute.xlu0 %421 }
  0xc8   : > { %v338_v31 = vadd.f32 %v334_v24, %v296_v20  ;;  %v437_v32 = vadd.f32 %v1618_v15, %v422_v30 }
  0xc9   : > { %v1182_v33 = vpop.eup %1181  ;;  %1193 = vtanh.f32 %v399_v28 }
  0xca   : > { %v1184_v35 = vpop.eup %1183  ;;  %v369_v36 = vmul.f32 %v1182_v33, %v368_v27  ;;  %1195 = vtanh.f32 %v437_v32  ;;  %814 = vperm.xlu1 %1161, %v1520_v3   ;;  %v388_v37 = vpop.permute.xlu1 %387 }
  0xcb   : > { %v370_v38 = vmul.f32 %v1184_v35, %v368_v27  ;;  %v400_v40 = vadd.f32 %v397_v50, %v388_v37 }
  0xcc   : > { %v373_v41 = vadd.f32 %v369_v36, %v335_v14  ;;  %v456_v43 = vpop.permute.xlu0 %455 }
  0xcd   : > { %v1186_v44 = vpop.eup %1185  ;;  %v374_v46 = vadd.f32 %v370_v38, %v336_v11  ;;  %1197 = vtanh.f32 %v400_v40  ;;  %v474_v47 = vadd.f32 %v1627_v34, %v456_v43 }
  0xce   : > { %v1188_v48 = vpop.eup %1187  ;;  %v371_v49 = vmul.f32 %v1186_v44, %v368_v27  ;;  %1164 = vset.pattern.permute.xlu1 %v1406_v19 }
  0xcf   : > { %v407_v51 = vmul.f32 %v1188_v48, %v406_v42  ;;  %844 = vperm.xlu1 %1164, %v1522_v4   ;;  %v418_v3 = vpop.permute.xlu1 %417  ;;  %1199 = vtanh.f32 %v474_v47 }
  0xd0   : > { %v375_v52 = vadd.f32 %v371_v49, %v337_v26  ;;  %v436_v50 = vadd.f32 %v1618_v15, %v418_v3  ;;  %v468_v53 = vpop.permute.xlu0 %467  ;;  %v482_v26 = vstv %s1030_s30 }
  0xd1   : > { %v1190_v54 = vpop.eup %1189  ;;  %v411_v55 = vadd.f32 %v407_v51, %v373_v41  ;;  %v477_v61 = vadd.f32 %v1627_v34, %v468_v53 }
  0xd2   : > { %v1192_v57 = vpop.eup %1191  ;;  %v372_v58 = vmul.f32 %v1190_v54, %v368_v27  ;;  %1201 = vtanh.f32 %v436_v50 }
  0xd3   : > { %v410_v59 = vmul.f32 %v1192_v57, %v406_v42  ;;  %848 = vperm.xlu1 %1164, %v1514_v1   ;;  %v426_v19 = vpop.permute.xlu1 %425 }
  0xd4   : > { %v376_v60 = vadd.f32 %v372_v58, %v338_v31  ;;  %v438_v4 = vadd.f32 %v1618_v15, %v426_v19 }
  0xd5   : > { %v498_v7 = vpop.permute.xlu0 %497 }
  0xd6   : > { %v1194_v5 = vpop.eup %1193  ;;  %v414_v6 = vadd.f32 %v410_v59, %v376_v60  ;;  %1203 = vtanh.f32 %v438_v4  ;;  %v513_v13 = vadd.f32 %v511_v0, %v498_v7 }
  0xd7   : > { %v1196_v8 = vpop.eup %1195  ;;  %v408_v9 = vmul.f32 %v1194_v5, %v406_v42  ;;  %v430_v10 = vpop.permute.xlu1 %429  ;;  %1205 = vtanh.f32 %v477_v61 }
  0xd8   : > { %v446_v1 = vmul.f32 %v1196_v8, %v444_v63  ;;  %v439_v11 = vadd.f32 %v1618_v15, %v430_v10  ;;  %v549_v15 = vrot.slane %v1586_v23, %v548_v16  ;;  %v558_v8 = vstv %s1032_s5 }
  0xd9   : > { %v412_v12 = vadd.f32 %v408_v9, %v374_v46 }
  0xda   : > { %v1198_v14 = vpop.eup %1197  ;;  %1207 = vtanh.f32 %v439_v11  ;;  %v532_v30 = vpop.permute.xlu0 %531 }
  0xdb   : > { %v450_v17 = vadd.f32 %v446_v1, %v412_v12  ;;  %v409_v18 = vmul.f32 %v1198_v14, %v406_v42  ;;  %1209 = vtanh.f32 %v513_v13  ;;  %v550_v37 = vadd.f32 %v549_v15, %v532_v30 }
  0xdc   : > { %v460_v20 = vpop.permute.xlu1 %459  ;;  %v1200_v24 = vpop.eup %1199 }
  0xdd   : > { %v413_v25 = vadd.f32 %v409_v18, %v375_v52  ;;  %v475_v27 = vadd.f32 %v1627_v34, %v460_v20  ;;  %v483_v32 = vmul.f32 %v1200_v24, %v482_v26  ;;  %v520_v52 = vstv %s1031_s4  ;;  %s1807_s4 = scalar_lea.hbm %s1863_s3, %s1048_s27 }
  0xde   : > { %v544_v47 = vpop.permute.xlu0 %543 }
  0xdf   : > { %v1202_v28 = vpop.eup %1201  ;;  %1211 = vtanh.f32 %v475_v27  ;;  %v553_v53 = vadd.f32 %v549_v15, %v544_v47 }
  0xe0   : > { %v445_v31 = vmul.f32 %v1202_v28, %v444_v63  ;;  %v464_v33 = vpop.permute.xlu1 %463 }
  0xe1   : > { %v476_v35 = vadd.f32 %v1627_v34, %v464_v33 }
  0xe2   : > { %v449_v36 = vadd.f32 %v445_v31, %v411_v55 }
  0xe3   : > { %v1204_v38 = vpop.eup %1203  ;;  %1213 = vtanh.f32 %v476_v35 }
  0xe4   : > { %v487_v40 = vadd.f32 %v483_v32, %v449_v36  ;;  %v447_v41 = vmul.f32 %v1204_v38, %v444_v63  ;;  %v1206_v42 = vpop.eup %1205  ;;  %1215 = vtanh.f32 %v550_v37 }
  0xe5   : > { %v494_v43 = vpop.permute.xlu1 %493  ;;  %v486_v49 = vmul.f32 %v1206_v42, %v482_v26 }
  0xe6   : > { %v451_v44 = vadd.f32 %v447_v41, %v413_v25  ;;  %v512_v46 = vadd.f32 %v511_v0, %v494_v43 }
  0xe7   : > { %v1208_v23 = vpop.eup %1207 }
  0xe8   : > { %v448_v48 = vmul.f32 %v1208_v23, %v444_v63  ;;  %1217 = vtanh.f32 %v512_v46  ;;  %v1210_v3 = vpop.eup %1209 }
  0xe9   : > { %v502_v51 = vpop.permute.xlu1 %501  ;;  %v522_v58 = vmul.f32 %v1210_v3, %v520_v52 }
  0xea   : > { %v452_v34 = vadd.f32 %v448_v48, %v414_v6  ;;  %v514_v50 = vadd.f32 %v511_v0, %v502_v51 }
  0xec   : > { %v1212_v54 = vpop.eup %1211  ;;  %v490_v55 = vadd.f32 %v486_v49, %v452_v34  ;;  %1219 = vtanh.f32 %v514_v50 }
  0xed   : > { %v484_v57 = vmul.f32 %v1212_v54, %v482_v26  ;;  %v506_v59 = vpop.permute.xlu1 %505  ;;  %1221 = vtanh.f32 %v553_v53 }
  0xee   : > { %v515_v19 = vadd.f32 %v511_v0, %v506_v59 }
  0xef   : > { %v488_v60 = vadd.f32 %v484_v57, %v450_v17 }
  0xf0   : > { %v1214_v4 = vpop.eup %1213  ;;  %1223 = vtanh.f32 %v515_v19 }
  0xf1   : > { %v526_v61 = vadd.f32 %v522_v58, %v488_v60  ;;  %v485_v63 = vmul.f32 %v1214_v4, %v482_v26  ;;  %v1216_v7 = vpop.eup %1215 }
  0xf2   : > { %v536_v5 = vpop.permute.xlu1 %535  ;;  %v559_v11 = vmul.f32 %v1216_v7, %v558_v8 }
  0xf3   : > { %v489_v6 = vadd.f32 %v485_v63, %v451_v44  ;;  %v551_v9 = vadd.f32 %v549_v15, %v536_v5 }
  0xf5   : > { %v1218_v10 = vpop.eup %1217  ;;  %1225 = vtanh.f32 %v551_v9 }
  0xf6   : > { %v521_v1 = vmul.f32 %v1218_v10, %v520_v52  ;;  %v540_v12 = vpop.permute.xlu1 %539 }
  0xf7   : > { %v552_v13 = vadd.f32 %v549_v15, %v540_v12 }
  0xf8   : > { %v525_v14 = vadd.f32 %v521_v1, %v487_v40  ;;  %v579_v40 = vpop.permute.xlu0 %578 }
  0xf9   : > { %v1220_v18 = vpop.eup %1219  ;;  %1227 = vtanh.f32 %v552_v13 }
  0xfa   : > { %v1648_v0 = vadd.f32 %v559_v11, %v525_v14  ;;  %v523_v17 = vmul.f32 %v1220_v18, %v520_v52  ;;  %v1222_v20 = vpop.eup %1221 }
  0xfb   : > { %v575_v24 = vpop.permute.xlu1 %574  ;;  %v562_v28 = vmul.f32 %v1222_v20, %v558_v8 }
  0xfc   : > { %v527_v25 = vadd.f32 %v523_v17, %v489_v6  ;;  %v613_v44 = vpop.permute.xlu0 %612 }
  0xfd   : > { %v1224_v26 = vpop.eup %1223 }
  0xfe   : > { %v524_v27 = vmul.f32 %v1224_v26, %v520_v52  ;;  %v1661_v52 = vld [vmem:[%s1582_s21 + $0x8] sm:$0xff]  ;;  %s232_s21 = sand.u32 1, %s1372_s13  }
  0xff   : > { %v583_v30 = vpop.permute.xlu1 %582  ;;  %v1668_v54 = vrot.slane %v1661_v52, %v320_v29  ;;  %v1677_v60 = vrot.slane %v1661_v52, %v358_v39  ;;  %v1682_v29 = vrot.slane %v1661_v52, %v396_v45  ;;  %v1694_v45 = vrot.slane %v1661_v52, %v434_v62  ;;  %s1021_s23 = sshll.u32 %s232_s21, 5  ;;  %s1815_s5 = scalar_lea.sflag [#allocation3], %s232_s21 }
 0x100   : > { %v528_v31 = vadd.f32 %v524_v27, %v490_v55  ;;  %v625_v46 = vpop.permute.xlu0 %624  ;;  %v592_v55 = vrot.slane %v1661_v52, %v282_v22  ;;  %v1700_v11 = vrot.slane %v1661_v52, %v472_v2  ;;  %v1707_v14 = vrot.slane %v1661_v52, %v548_v16  ;;  %s1791_s26 = scalar_lea.vmem [#allocation5], %s1021_s23 }
 0x101   : > { %v631_v59 = vadd.f32 %v1668_v54, %v613_v44  ;;  %v634_v5 = vadd.f32 %v1668_v54, %v625_v46  ;;  %v1717_v27 = vstv %s1034_s6  ;;  %s901_s28 = sshll.u32 %s1791_s26, 4  ;;  %s1407_s6 = smov [#allocation5]   ;;  %s1809_s28 = int_to_ptr.vmem [resolvable:$true] %s901_s28 }
 0x102   : > { %v1226_v32 = vpop.eup %1225  ;;  %v1650_v33 = vadd.f32 %v562_v28, %v528_v31  ;;  %v593_v19 = vadd.f32 %v592_v55, %v575_v24  ;;  %v594_v4 = vadd.f32 %v592_v55, %v579_v40  ;;  %v595_v18 = vadd.f32 %v592_v55, %v583_v30  ;;  %s1308_s15 = scalar_lea.vmem %s1809_s28, 512 }
 0x103   : > { %v560_v35 = vmul.f32 %v1226_v32, %v558_v8  ;;  %v587_v36 = vpop.permute.xlu1 %586  ;;  %1229 = vtanh.f32 %v631_v59  ;;  %v1720_v31 = vstv %s1033_s7  ;;  %p1309_p10 = scmp.ne.s32.totalorder %s1809_s28, %s1308_s15  ;;  %s1312_s7 = sshll.u32 %s1407_s6, 4  ;;  %s1313_s7 = int_to_ptr.vmem [resolvable:$false] %s1312_s7 }
 0x104   : > { %v655_v47 = vpop.permute.xlu0 %654  ;;  %1231 = vtanh.f32 %v593_v19  ;;  %v596_v9 = vadd.f32 %v592_v55, %v587_v36  ;;  %v820_v36 = vrot.slane %v1661_v52, %v510_v56  ;;  %p1315_p0 = scmp.lt.s32.totalorder %s1809_s28, %s1313_s7 }
 0x105   : > { %v1652_v15 = vadd.f32 %v560_v35, %v526_v61  ;;  %v670_v7 = vadd.f32 %v1677_v60, %v655_v47  ;;  %1233 = vtanh.f32 %v594_v4  ;;  %v1737_v47 = vstv %s1710_s8  ;;  %p1310_p11 = pnand %p1309_p10, %p1470_p4  ;;  %s1314_s8 = scalar_lea.vmem %s1313_s7, 1024 }
 0x106   : > { %v1228_v37 = vpop.eup %1227  ;;  %p1316_p1 = scmp.lt.s32.totalorder %s1314_s8, %s1308_s15 }
 0x107   : > { %v561_v38 = vmul.f32 %v1228_v37, %v558_v8  ;;  %p1311_p13 = pneg %p1310_p11 }
 0x108   : > { %v617_v41 = vpop.permute.xlu1 %616  ;;  %v689_v49 = vpop.permute.xlu0 %688  ;;  %p1317_p2 = por %p1316_p1, %p1315_p0 }
 0x109   : > { %v1654_v42 = vadd.f32 %v561_v38, %v527_v25  ;;  %v707_v39 = vadd.f32 %v1682_v29, %v689_v49  ;;  %v632_v12 = vadd.f32 %v1668_v54, %v617_v41 }
 0x10a   : > { %p1318_p3 = pnand %p1317_p2, %p1311_p13 }
 0x10c   : > { %v1656_v43 = vpop.permute.xlu1 %620  ;;  %v701_v3 = vpop.permute.xlu0 %700 }
 0x10d   : > { %v710_v8 = vadd.f32 %v1682_v29, %v701_v3  ;;  %v633_v40 = vadd.f32 %v1668_v54, %v1656_v43 }
 0x110   : > { %v731_v53 = vpop.permute.xlu0 %730  ;;  %v1230_v26 = vpop.eup %1229 }
 0x111   : > { %v651_v23 = vpop.permute.xlu1 %650  ;;  %v746_v20 = vadd.f32 %v1694_v45, %v731_v53  ;;  %v1232_v30 = vpop.eup %1231  ;;  %v640_v38 = vmul.f32 %v1230_v26, %v1717_v27  ;;  %v1742_v53 = vstv %s1714_s9 }
 0x112   : > { %v669_v22 = vadd.f32 %v1677_v60, %v651_v23  ;;  %v1234_v35 = vpop.eup %1233  ;;  %v602_v46 = vmul.f32 %v1232_v30, %v1720_v31 }
 0x114   : > { %v765_v58 = vpop.permute.xlu0 %764  ;;  %1235 = vtanh.f32 %v669_v22  ;;  %v1753_v22 = vstv %s1723_s10 }
 0x115   : > { %v1658_v48 = vpop.permute.xlu1 %658  ;;  %1237 = vtanh.f32 %v634_v5  ;;  %v783_v2 = vadd.f32 %v1700_v11, %v765_v58  ;;  %v1757_v5 = vstv %s1731_s11 }
 0x116   : > { %1239 = vtanh.f32 %v670_v7  ;;  %v671_v21 = vadd.f32 %v1677_v60, %v1658_v48 }
 0x117   : > { %1241 = vtanh.f32 %v707_v39 }
 0x118   : > { %v777_v63 = vpop.permute.xlu0 %776  ;;  %1243 = vtanh.f32 %v710_v8 }
 0x119   : > { %v663_v51 = vpop.permute.xlu1 %662  ;;  %1245 = vtanh.f32 %v596_v9  ;;  %v786_v32 = vadd.f32 %v1700_v11, %v777_v63 }
 0x11a   : > { %v672_v13 = vadd.f32 %v1677_v60, %v663_v51 }
 0x11c   : > { %v807_v10 = vpop.permute.xlu0 %806 }
 0x11e   : > { %v693_v34 = vpop.permute.xlu1 %692 }
 0x11f   : > { %v708_v16 = vadd.f32 %v1682_v29, %v693_v34  ;;  %v822_v34 = vadd.f32 %v820_v36, %v807_v10  ;;  %v603_v10 = vmul.f32 %v1234_v35, %v1720_v31 }
 0x120   : > { %v841_v17 = vpop.permute.xlu0 %840 }
 0x121   : > { %v859_v25 = vadd.f32 %v1707_v14, %v841_v17  ;;  %v1236_v37 = vpop.eup %1235 }
 0x122   : > { %v1663_v50 = vpop.permute.xlu1 %696  ;;  %v1238_v44 = vpop.eup %1237  ;;  %v678_v3 = vmul.f32 %v1236_v37, %v1737_v47 }
 0x123   : > { %v1240_v23 = vpop.eup %1239  ;;  %v709_v48 = vadd.f32 %v1682_v29, %v1663_v50  ;;  %v643_v29 = vmul.f32 %v1238_v44, %v1717_v27 }
 0x124   : > { %v853_v43 = vpop.permute.xlu0 %852  ;;  %v1242_v51 = vpop.eup %1241  ;;  %v679_v30 = vmul.f32 %v1240_v23, %v1737_v47 }
 0x125   : > { %v1244_v52 = vpop.eup %1243  ;;  %v862_v58 = vadd.f32 %v1707_v14, %v853_v43  ;;  %v716_v63 = vmul.f32 %v1242_v51, %v1742_v53 }
 0x126   : > { %v1246_v55 = vpop.eup %1245  ;;  %v719_v37 = vmul.f32 %v1244_v52, %v1742_v53 }
 0x127   : > { %v727_v57 = vpop.permute.xlu1 %726 }
 0x128   : > { %v745_v1 = vadd.f32 %v1694_v45, %v727_v57  ;;  %v644_v57 = vadd.f32 %v640_v38, %v602_v46 }
 0x12a   : > { %1247 = vtanh.f32 %v745_v1  ;;  %v682_v4 = vadd.f32 %v678_v3, %v644_v57 }
 0x12b   : > { %v1684_v61 = vpop.permute.xlu1 %734  ;;  %1249 = vtanh.f32 %v632_v12 }
 0x12c   : > { %1251 = vtanh.f32 %v672_v13  ;;  %v747_v19 = vadd.f32 %v1694_v45, %v1684_v61 }
 0x12d   : > { %1253 = vtanh.f32 %v595_v18 }
 0x12e   : > { %1255 = vtanh.f32 %v783_v2 }
 0x12f   : > { %v739_v6 = vpop.permute.xlu1 %738  ;;  %1257 = vtanh.f32 %v746_v20 }
 0x130   : > { %v748_v28 = vadd.f32 %v1694_v45, %v739_v6  ;;  %1259 = vtanh.f32 %v859_v25  ;;  %v605_v6 = vmul.f32 %v1246_v55, %v1720_v31  ;;  %v1769_v25 = vstv %s1746_s18 }
 0x131   : > { %1261 = vtanh.f32 %v708_v16 }
 0x132   : > { %1263 = vtanh.f32 %v748_v28  ;;  %v647_v2 = vadd.f32 %v643_v29, %v605_v6 }
 0x133   : > { %1265 = vtanh.f32 %v786_v32 }
 0x134   : > { %v769_v62 = vpop.permute.xlu1 %768 }
 0x135   : > { %v784_v49 = vadd.f32 %v1700_v11, %v769_v62  ;;  %v720_v62 = vadd.f32 %v716_v63, %v682_v4 }
 0x137   : > { %v1248_v59 = vpop.eup %1247 }
 0x138   : > { %v773_v24 = vpop.permute.xlu1 %772  ;;  %v1250_v60 = vpop.eup %1249  ;;  %v754_v8 = vmul.f32 %v1248_v59, %v1753_v22 }
 0x139   : > { %v1252_v50 = vpop.eup %1251  ;;  %v785_v7 = vadd.f32 %v1700_v11, %v773_v24  ;;  %v641_v1 = vmul.f32 %v1250_v60, %v1717_v27 }
 0x13a   : > { %v1254_v61 = vpop.eup %1253  ;;  %v681_v11 = vmul.f32 %v1252_v50, %v1737_v47  ;;  %v758_v20 = vadd.f32 %v754_v8, %v720_v62 }
 0x13b   : > { %v1256_v9 = vpop.eup %1255  ;;  %v645_v28 = vadd.f32 %v641_v1, %v603_v10 }
 0x13c   : > { %v1258_v13 = vpop.eup %1257  ;;  %v792_v24 = vmul.f32 %v1256_v9, %v1757_v5 }
 0x13d   : > { %v803_v41 = vpop.permute.xlu1 %802  ;;  %v1260_v18 = vpop.eup %1259  ;;  %v683_v51 = vadd.f32 %v679_v30, %v645_v28 }
 0x13e   : > { %v821_v56 = vadd.f32 %v820_v36, %v803_v41  ;;  %v1262_v17 = vpop.eup %1261  ;;  %v829_v41 = vstv %s1759_s19  ;;  %v796_v46 = vadd.f32 %v792_v24, %v758_v20  ;;  %v868_v23 = vmul.f32 %v1260_v18, %v1769_v25 }
 0x13f   : > { %v1264_v26 = vpop.eup %1263 }
 0x140   : > { %1267 = vtanh.f32 %v821_v56  ;;  %v1266_v35 = vpop.eup %1265 }
 0x141   : > { %1269 = vtanh.f32 %v633_v40  ;;  %v811_v54 = vpop.permute.xlu1 %810  ;;  %v717_v40 = vmul.f32 %v1262_v17, %v1742_v53  ;;  %v795_v60 = vmul.f32 %v1266_v35, %v1757_v5 }
 0x142   : > { %1271 = vtanh.f32 %v671_v21  ;;  %v823_v12 = vadd.f32 %v820_v36, %v811_v54  ;;  %v757_v21 = vmul.f32 %v1264_v26, %v1753_v22 }
 0x143   : > { %1273 = vtanh.f32 %v784_v49  ;;  %v721_v57 = vadd.f32 %v717_v40, %v683_v51 }
 0x144   : > { %1275 = vtanh.f32 %v822_v34 }
 0x145   : > { %1277 = vtanh.f32 %v709_v48  ;;  %v815_v39 = vpop.permute.xlu1 %814 }
 0x146   : > { %v824_v45 = vadd.f32 %v820_v36, %v815_v39  ;;  %1279 = vtanh.f32 %v862_v58  ;;  %v685_v36 = vadd.f32 %v681_v11, %v647_v2  ;;  %v755_v58 = vmul.f32 %v1258_v13, %v1753_v22 }
 0x147   : > { %1281 = vtanh.f32 %v747_v19 }
 0x148   : > { %1283 = vtanh.f32 %v824_v45  ;;  %v723_v52 = vadd.f32 %v719_v37, %v685_v36  ;;  %v759_v8 = vadd.f32 %v755_v58, %v721_v57 }
 0x149   : > { %1285 = vtanh.f32 %v785_v7 }
 0x14a   : > { %v845_v16 = vpop.permute.xlu1 %844  ;;  %1287 = vtanh.f32 %v823_v12  ;;  %v761_v19 = vadd.f32 %v757_v21, %v723_v52 }
 0x14b   : > { %v860_v32 = vadd.f32 %v1707_v14, %v845_v16 }
 0x14c   : > { %v799_v10 = vadd.f32 %v795_v60, %v761_v19 }
 0x14d   : > { %v1268_v38 = vpop.eup %1267  ;;  %1289 = vtanh.f32 %v860_v32 }
 0x14e   : > { %v1270_v44 = vpop.eup %1269  ;;  %v830_v56 = vmul.f32 %v1268_v38, %v829_v41  ;;  %v849_v49 = vpop.permute.xlu1 %848 }
 0x14f   : > { %v1272_v43 = vpop.eup %1271  ;;  %v861_v3 = vadd.f32 %v1707_v14, %v849_v49  ;;  %v642_v55 = vmul.f32 %v1270_v44, %v1717_v27  ;;  %v604_v14 = vmul.f32 %v1254_v61, %v1720_v31 }
 0x150   : > { %v1274_v34 = vpop.eup %1273  ;;  %v834_v48 = vadd.f32 %v830_v56, %v796_v46  ;;  %v680_v50 = vmul.f32 %v1272_v43, %v1737_v47 }
 0x151   : > { %v1276_v54 = vpop.eup %1275  ;;  %1291 = vtanh.f32 %v861_v3  ;;  %v793_v29 = vmul.f32 %v1274_v34, %v1757_v5  ;;  %v646_v6 = vadd.f32 %v642_v55, %v604_v14 }
 0x152   : > { %v1278_v59 = vpop.eup %1277  ;;  %v872_v4 = vadd.f32 %v868_v23, %v834_v48 }
 0x153   : > { %v1280_v63 = vpop.eup %1279  ;;  %v718_v45 = vmul.f32 %v1278_v59, %v1742_v53  ;;  %v684_v31 = vadd.f32 %v680_v50, %v646_v6  ;;  %v797_v61 = vadd.f32 %v793_v29, %v759_v8 }
 0x154   : > { %v1282_v7 = vpop.eup %1281  ;;  %v876_v39 = vadd.f32 %v872_v4, %v1648_v0  ;;  %v871_v12 = vmul.f32 %v1280_v63, %v1769_v25  ;;  %v831_v0 = vmul.f32 %v1276_v54, %v829_v41 }
 0x155   : > { %v1284_v27 = vpop.eup %1283  ;;  %v756_v47 = vmul.f32 %v1282_v7, %v1753_v22  ;;  %v722_v11 = vadd.f32 %v718_v45, %v684_v31 }
 0x156   : > { %v1286_v9 = vpop.eup %1285  ;;  %v833_v1 = vmul.f32 %v1284_v27, %v829_v41  ;;  %880 = vst [vmem:[%s1791_s26] sm:$0xff] %v876_v39  ;;  %v835_v20 = vadd.f32 %v831_v0, %v797_v61 }
 0x157   : > { %v1288_v13 = vpop.eup %1287  ;;  %v794_v53 = vmul.f32 %v1286_v9, %v1757_v5  ;;  %v760_v2 = vadd.f32 %v756_v47, %v722_v11 }
 0x158   : > { %v837_v62 = vadd.f32 %v833_v1, %v799_v10  ;;  %v832_v24 = vmul.f32 %v1288_v13, %v829_v41 }
 0x159   : > { %v798_v26 = vadd.f32 %v794_v53, %v760_v2 }
 0x15a   : > { %v1290_v18 = vpop.eup %1289  ;;  %v875_v17 = vadd.f32 %v871_v12, %v837_v62 }
 0x15b   : > { %v869_v16 = vmul.f32 %v1290_v18, %v1769_v25  ;;  %v836_v32 = vadd.f32 %v832_v24, %v798_v26 }
 0x15c   : > { %v879_v22 = vadd.f32 %v875_v17, %v1650_v33 }
 0x15d   : > { %v873_v28 = vadd.f32 %v869_v16, %v835_v20 }
 0x15e   : > { %v1292_v30 = vpop.eup %1291  ;;  %883 = vst [vmem:[%s1791_s26 + $0x18] sm:$0xff] %v879_v22 }
 0x15f   : > { %v877_v5 = vadd.f32 %v873_v28, %v1652_v15  ;;  %v870_v35 = vmul.f32 %v1292_v30, %v1769_v25 }
 0x161   : > { %v874_v36 = vadd.f32 %v870_v35, %v836_v32  ;;  %881 = vst [vmem:[%s1791_s26 + $0x8] sm:$0xff] %v877_v5 }
 0x163   : > { %v878_v33 = vadd.f32 %v874_v36, %v1654_v42 }
 0x165   : > { %882 = vst [vmem:[%s1791_s26 + $0x10] sm:$0xff] %v878_v33 }
 0x166   : > { %1321 = shalt.err (!%p1318_p3)
}
 0x167   : > { %s1322_s9 = scalar_lea.hbm %s1807_s4, 512  ;;  %s1326_s18 = scalar_lea.hbm %s1863_s3, 1024 }
 0x168   : > { %p1323_p5 = scmp.ne.s32.totalorder %s1807_s4, %s1322_s9  ;;  %p1327_p9 = scmp.lt.s32.totalorder %s1807_s4, %s1863_s3 }
 0x169   : > { %p1328_p12 = scmp.lt.s32.totalorder %s1326_s18, %s1322_s9 }
 0x16a   : > { %p1324_p6 = pnand %p1323_p5, %p1470_p4 }
 0x16b   : > { %p1329_p10 = por %p1328_p12, %p1327_p9 }
 0x16c   : > { %p1325_p7 = pneg %p1324_p6 }
 0x16e   : > { %p1330_p11 = pnand %p1329_p10, %p1325_p7 }
 0x170   : > { %1333 = shalt.err (!%p1330_p11)
}
 0x171   : > { %s1408_s23 = smov 128   ;;  %s1409_s26 = smov 8  }
 0x172   : > { %1053 = dma.vmem_to_hbm [thread:$0]  (%p1470_p4), %s1809_s28, 512, %s1807_s4, %s1815_s5, %s1408_s23, %s1408_s23, %s1409_s26  }
 0x173 PF: > { %p1065_p13 = scmp.ge.s32.totalorder %s1388_s17, 2  ;;  %s916_s27 = sand.u32 1, %s1368_s12  }
 0x174   : > { %s917_s29 = scalar_lea.sflag [#allocation3], %s916_s27 }
 0x175   : > { %p1060_p0 = pnand %p1065_p13, %p1477_p8 }
 0x177   : > { %p1061_p1 = pneg %p1060_p0 }
 0x179   : > { %1363 = dma.done.wait (%p1061_p1), %s917_s29, 512  }
 0x17a   : > { %1365 = vsyncadd (%p1061_p1), %s917_s29, 4294966784  ;;  %s17_s17 = sadd.s32 1, %s1388_s17   ;;  %s1868_s12 = smov %s1372_s13 }
 0x17b   : > { %p14_p2 = scmp.ge.s32.totalorder %s17_s17, 4   ;;  %s1869_s13 = smov %s1376_s14 }
 0x17c   : > { %s1870_s14 = smov %s1483_s25  ;;  %s1871_s15 = smov %s1384_s16 }
 0x17d   : > { %s1872_s16 = smov %s1874_s20  ;;  %16 = sbr.rel (!%p14_p2) target bundleno = 5 (0x5), region = 75 }
 0x182   :  { %922 = vsyncpa [#allocation3], 1 }
 0x183   :  { %924 = vsyncpa [#allocation3 + $0x1], 1 }
 0x184   :  { %925 = vsyncpa [#allocation4], 1 }
 0x185   :  { %927 = vsyncpa [#allocation4 + $0x1], 1 }

</bundles_post_ra>
